<compile_context>
chip_gen: v5e
topology: v5e:2x2
jax: 0.10.0
libtpu: 0.0.40
codegen_flags: <defaults>
</compile_context>

<pallas_src>
import jax
import jax.numpy as jnp
from jax.experimental import pallas as pl
from jax.experimental.pallas import tpu as pltpu


def _pick_tile(n, target):
    """Largest tile t <= target with t % 128 == 0 and n % t == 0 (else full n)."""
    if n % 128 != 0:
        return n  # small / ragged N: a single full-extent block is still legal
    t = min(max(target - target % 128, 128), n)
    while n % t:
        t -= 128
    return t


def _make_deam_kernel(mxu_dtype):
    """Flash-style DEAM attention kernel operating on (C, N)-layout tiles."""

    def kernel(dq_ref, dk_ref, xk_ref, wq_ref, bq_ref, wk_ref, bk_ref,
               wv_ref, bv_ref, o_ref, q_scr, m_scr, l_scr, acc_scr):
        kv = pl.program_id(2)

        @pl.when(kv == 0)
        def _():
            # Project the query tile once per (batch, q-tile) and cache it.
            # The softmax scale is already folded into wq/bq by the wrapper.
            q = jnp.dot(wq_ref[...], dq_ref[0],
                        preferred_element_type=jnp.float32) + bq_ref[...]
            q_scr[...] = q
            m_scr[...] = jnp.full(m_scr.shape, -jnp.inf, dtype=m_scr.dtype)
            l_scr[...] = jnp.zeros(l_scr.shape, dtype=l_scr.dtype)
            acc_scr[...] = jnp.zeros(acc_scr.shape, dtype=acc_scr.dtype)

        # 1x1 convs on the current KV tile: (Cout, C) @ (C, tk).
        k = jnp.dot(wk_ref[...], dk_ref[0],
                    preferred_element_type=jnp.float32) + bk_ref[...]   # (Ck, tk)
        v = jnp.dot(wv_ref[...], xk_ref[0],
                    preferred_element_type=jnp.float32) + bv_ref[...]   # (C,  tk)
        q = q_scr[...]                                                  # (Ck, tq)

        # s[j, i] = <k_j, q_i>: contract the channel dim of both operands via
        # dot_general dimension numbers (no explicit k.T / q.T materialized).
        s = jax.lax.dot_general(
            k.astype(mxu_dtype), q.astype(mxu_dtype),
            (((0,), (0,)), ((), ())),
            preferred_element_type=jnp.float32)                         # (tk, tq)

        # Online softmax over the key axis (sublanes).  Stats are (1, tq):
        # lane-dense and broadcast directly over the (C, tq) accumulator.
        m_prev = m_scr[...]
        m_new = jnp.maximum(m_prev, jnp.max(s, axis=0, keepdims=True))  # (1, tq)
        alpha = jnp.exp(m_prev - m_new)                                 # (1, tq)
        p = jnp.exp(s - m_new)                                          # (tk, tq)
        l_scr[...] = alpha * l_scr[...] + jnp.sum(p, axis=0, keepdims=True)
        acc_scr[...] = alpha * acc_scr[...] + jnp.dot(
            v.astype(mxu_dtype), p.astype(mxu_dtype),
            preferred_element_type=jnp.float32)                         # (C, tq)
        m_scr[...] = m_new

        @pl.when(kv == pl.num_programs(2) - 1)
        def _():
            inv_l = pl.reciprocal(l_scr[...], approx=True)              # EUP
            o_ref[0] = (acc_scr[...] * inv_l).astype(o_ref.dtype)

    return kernel


def deam_forward(inp, diff, params, ds, *, tq=256, tk=256, use_bf16_mxu=False):
    """DEAM.forward.  inp/diff: (B, C, H, W) float32 NCHW.

    params (PyTorch Conv2d 1x1 layout, spatial 1x1 dims squeezed):
      wq/wk: (Ck, C), bq/bk: (Ck,), wv: (C, C), bv: (C,)   with Ck = C // 8.
    """
    B, C, H, W = inp.shape
    if H % ds or W % ds:
        # PyTorch would also fail: interpolate goes to (H//ds)*ds, which then
        # shape-mismatches the residual add with `input`.
        raise ValueError(f"H={H}, W={W} must be divisible by ds={ds}")
    Ck = params["wq"].shape[0]
    Hp, Wp = H // ds, W // ds
    N = Hp * Wp

    # AvgPool2d(ds) in channels-first layout; the reshape to (B, C, N) is free
    # (no transpose), so kernel inputs/outputs are lane-dense along N.
    x_p = inp.reshape(B, C, Hp, ds, Wp, ds).mean(axis=(3, 5)).reshape(B, C, N)
    d_p = diff.reshape(B, C, Hp, ds, Wp, ds).mean(axis=(3, 5)).reshape(B, C, N)

    # Fold the key_channel**-0.5 softmax scale into the query projection
    # (one tiny host-side op instead of scaling the N x N energy per step).
    scale = float(Ck) ** -0.5
    wq = (params["wq"] * scale).astype(jnp.float32)
    bq = (params["bq"] * scale).reshape(Ck, 1).astype(jnp.float32)
    wk = params["wk"].astype(jnp.float32)
    bk = params["bk"].reshape(Ck, 1).astype(jnp.float32)
    wv = params["wv"].astype(jnp.float32)
    bv = params["bv"].reshape(C, 1).astype(jnp.float32)

    tq = _pick_tile(N, tq)
    tk = _pick_tile(N, tk)
    nq, nk = N // tq, N // tk

    mxu_dtype = jnp.bfloat16 if use_bf16_mxu else jnp.float32
    kernel = _make_deam_kernel(mxu_dtype)

    flops = 2 * B * N * C * (2 * Ck + C) + 2 * B * N * N * (Ck + C)
    bytes_accessed = 4 * (3 * B * N * C + 2 * Ck * C + C * C + 2 * Ck + C)

    out_cn = pl.pallas_call(
        kernel,
        out_shape=jax.ShapeDtypeStruct((B, C, N), jnp.float32),
        grid_spec=pltpu.PrefetchScalarGridSpec(
            num_scalar_prefetch=0,
            grid=(B, nq, nk),
            in_specs=[
                pl.BlockSpec((1, C, tq), lambda b, qi, ki: (b, 0, qi)),  # diff, Q tile
                pl.BlockSpec((1, C, tk), lambda b, qi, ki: (b, 0, ki)),  # diff, K tile
                pl.BlockSpec((1, C, tk), lambda b, qi, ki: (b, 0, ki)),  # x,    V tile
                # Weights/biases: constant block index -> fetched once and kept
                # resident by the pipeline (tiny footprint).
                pl.BlockSpec((Ck, C), lambda b, qi, ki: (0, 0)),         # Wq (pre-scaled)
                pl.BlockSpec((Ck, 1), lambda b, qi, ki: (0, 0)),         # bq (pre-scaled)
                pl.BlockSpec((Ck, C), lambda b, qi, ki: (0, 0)),         # Wk
                pl.BlockSpec((Ck, 1), lambda b, qi, ki: (0, 0)),         # bk
                pl.BlockSpec((C, C), lambda b, qi, ki: (0, 0)),          # Wv
                pl.BlockSpec((C, 1), lambda b, qi, ki: (0, 0)),          # bv
            ],
            out_specs=pl.BlockSpec((1, C, tq), lambda b, qi, ki: (b, 0, qi)),
            scratch_shapes=[
                pltpu.VMEM((Ck, tq), jnp.float32),   # cached projected q tile
                pltpu.VMEM((1, tq), jnp.float32),    # running max
                pltpu.VMEM((1, tq), jnp.float32),    # running sum
                pltpu.VMEM((C, tq), jnp.float32),    # output accumulator
            ],
        ),
        compiler_params=pltpu.CompilerParams(
            dimension_semantics=("parallel", "parallel", "arbitrary"),
            # Tiles are sized well below this; explicit cap keeps headroom
            # under v7x's 64 MiB physical VMEM.
            vmem_limit_bytes=48 * 1024 * 1024,
        ),
        cost_estimate=pl.CostEstimate(
            flops=int(flops),
            transcendentals=int(B * N * N),
            bytes_accessed=int(bytes_accessed),
        ),
    )(d_p, d_p, x_p, wq, bq, wk, bk, wv, bv)

    # Nearest-neighbour upsample back to (H, W) + residual add.  XLA fuses the
    # broadcast + reshape + add into a single pass over `inp`/output.
    out_p = out_cn.reshape(B, C, Hp, 1, Wp, 1)
    out = jnp.broadcast_to(out_p, (B, C, Hp, ds, Wp, ds)).reshape(B, C, H, W)
    return out + inp


def deam_reference(inp, diff, params, ds):
    """Pure-JAX reference mirroring the PyTorch forward, for validation."""
    B, C, H, W = inp.shape
    Ck = params["wq"].shape[0]
    Hp, Wp = H // ds, W // ds
    N = Hp * Wp
    x_p = inp.reshape(B, C, Hp, ds, Wp, ds).mean(axis=(3, 5)).reshape(B, C, N)
    d_p = diff.reshape(B, C, Hp, ds, Wp, ds).mean(axis=(3, 5)).reshape(B, C, N)
    q = jnp.einsum("oc,bcn->bon", params["wq"], d_p) + params["bq"][None, :, None]
    k = jnp.einsum("oc,bcn->bon", params["wk"], d_p) + params["bk"][None, :, None]
    v = jnp.einsum("oc,bcn->bon", params["wv"], x_p) + params["bv"][None, :, None]
    energy = jnp.einsum("bci,bcj->bij", q, k) * (float(Ck) ** -0.5)
    attn = jax.nn.softmax(energy, axis=-1)
    out = jnp.einsum("bcj,bij->bci", v, attn).reshape(B, C, Hp, Wp)
    up = jnp.repeat(jnp.repeat(out, ds, axis=2), ds, axis=3)
    return up + inp


if __name__ == "__main__":
    # Small but non-trivial: C=64 -> key_channel=8, H=W=32, ds=2 -> N=256, so
    # with tq=tk=128 the flash tiling / online softmax runs over a 2x2x2 grid.
    B, C, H, W = 2, 64, 32, 32
    ds = 2
    Ck = C // 8

    key = jax.random.PRNGKey(0)
    k_inp, k_diff, kq, kbq, kk_, kbk, kv_, kbv = jax.random.split(key, 8)

    inp = jax.random.normal(k_inp, (B, C, H, W), dtype=jnp.float32)
    diff = jax.random.normal(k_diff, (B, C, H, W), dtype=jnp.float32)

    # Conv2d(kernel_size=1) weights in PyTorch (out_channels, in_channels) layout.
    params = {
        "wq": 0.1 * jax.random.normal(kq, (Ck, C), dtype=jnp.float32),
        "bq": 0.05 * jax.random.normal(kbq, (Ck,), dtype=jnp.float32),
        "wk": 0.1 * jax.random.normal(kk_, (Ck, C), dtype=jnp.float32),
        "bk": 0.05 * jax.random.normal(kbk, (Ck,), dtype=jnp.float32),
        "wv": 0.1 * jax.random.normal(kv_, (C, C), dtype=jnp.float32),
        "bv": 0.05 * jax.random.normal(kbv, (C,), dtype=jnp.float32),
    }

    out = jax.block_until_ready(
        deam_forward(inp, diff, params, ds, tq=128, tk=128))
    ref = jax.block_until_ready(deam_reference(inp, diff, params, ds))

    assert out.shape == (B, C, H, W), out.shape
    # fp32 compute throughout; small slack covers the approx reciprocal (EUP)
    # used in the softmax finalize and accumulation-order differences.
    max_err = float(jnp.max(jnp.abs(out - ref)))
    assert jnp.allclose(out, ref, atol=2e-3, rtol=2e-3), max_err

    print("KERNEL_OK")
</pallas_src>

<mosaic_0001>
module attributes {stable_mosaic.version = 11 : i64} {
  func.func @kernel(%arg0: i32, %arg1: i32, %arg2: i32, %arg3: memref<1x64x128xf32, #tpu.memory_space<vmem>>, %arg4: memref<1x64x128xf32, #tpu.memory_space<vmem>>, %arg5: memref<1x64x128xf32, #tpu.memory_space<vmem>>, %arg6: memref<8x64xf32, #tpu.memory_space<vmem>>, %arg7: memref<8x1xf32, #tpu.memory_space<vmem>>, %arg8: memref<8x64xf32, #tpu.memory_space<vmem>>, %arg9: memref<8x1xf32, #tpu.memory_space<vmem>>, %arg10: memref<64x64xf32, #tpu.memory_space<vmem>>, %arg11: memref<64x1xf32, #tpu.memory_space<vmem>>, %arg12: memref<1x64x128xf32, #tpu.memory_space<vmem>>, %arg13: memref<8x128xf32, #tpu.memory_space<vmem>>, %arg14: memref<1x128xf32, #tpu.memory_space<vmem>>, %arg15: memref<1x128xf32, #tpu.memory_space<vmem>>, %arg16: memref<64x128xf32, #tpu.memory_space<vmem>>) attributes {dimension_semantics = [#tpu.dimension_semantics<parallel>, #tpu.dimension_semantics<parallel>, #tpu.dimension_semantics<arbitrary>], iteration_bounds = array<i64: 2, 2, 2>, scalar_prefetch = 0 : i64, scratch_operands = 4 : i64, tpu.core_type = #tpu.core_type<tc>, window_params = [{transform_indices = @transform_0, window_bounds = array<i64: 1, 64, 128>}, {transform_indices = @transform_1, window_bounds = array<i64: 1, 64, 128>}, {transform_indices = @transform_2, window_bounds = array<i64: 1, 64, 128>}, {pipeline_mode = #tpu.pipeline_mode<synchronous>, transform_indices = @transform_3, window_bounds = array<i64: 8, 64>}, {pipeline_mode = #tpu.pipeline_mode<synchronous>, transform_indices = @transform_4, window_bounds = array<i64: 8, 1>}, {pipeline_mode = #tpu.pipeline_mode<synchronous>, transform_indices = @transform_5, window_bounds = array<i64: 8, 64>}, {pipeline_mode = #tpu.pipeline_mode<synchronous>, transform_indices = @transform_6, window_bounds = array<i64: 8, 1>}, {pipeline_mode = #tpu.pipeline_mode<synchronous>, transform_indices = @transform_7, window_bounds = array<i64: 64, 64>}, {pipeline_mode = #tpu.pipeline_mode<synchronous>, transform_indices = @transform_8, window_bounds = array<i64: 64, 1>}, {transform_indices = @transform_9, window_bounds = array<i64: 1, 64, 128>}]} {
    %c0_i32 = arith.constant 0 : i32
    %0 = arith.cmpi eq, %arg2, %c0_i32 : i32
    %1 = arith.extui %0 : i1 to i32
    %c0_i32_0 = arith.constant 0 : i32
    %2 = arith.cmpi ne, %1, %c0_i32_0 : i32
    scf.if %2 {
      %c0_34 = arith.constant 0 : index
      %c0_35 = arith.constant 0 : index
      %44 = vector.load %arg6[%c0_34, %c0_35] : memref<8x64xf32, #tpu.memory_space<vmem>>, vector<8x64xf32>
      %c0_36 = arith.constant 0 : index
      %c0_37 = arith.constant 0 : index
      %c0_38 = arith.constant 0 : index
      %45 = vector.load %arg3[%c0_36, %c0_37, %c0_38] : memref<1x64x128xf32, #tpu.memory_space<vmem>>, vector<1x64x128xf32>
      %46 = vector.shape_cast %45 : vector<1x64x128xf32> to vector<64x128xf32>
      %cst_39 = arith.constant dense<0.000000e+00> : vector<8x128xf32>
      %47 = tpu.matmul %44, %46, %cst_39 {dimension_numbers = #tpu.dot_dimension_numbers<[1], [0], [0], [1], [0, 0, 1, 1], [], []>} : vector<8x64xf32>, vector<64x128xf32>, vector<8x128xf32> -> vector<8x128xf32>
      %c0_40 = arith.constant 0 : index
      %c0_41 = arith.constant 0 : index
      %48 = vector.load %arg7[%c0_40, %c0_41] : memref<8x1xf32, #tpu.memory_space<vmem>>, vector<8x1xf32>
      %49 = vector.broadcast %48 : vector<8x1xf32> to vector<8x128xf32>
      %50 = arith.addf %47, %49 : vector<8x128xf32>
      %c0_42 = arith.constant 0 : index
      %c0_43 = arith.constant 0 : index
      %51 = vector.load %arg13[%c0_42, %c0_43] : memref<8x128xf32, #tpu.memory_space<vmem>>, vector<8x128xf32>
      tpu.vector_store %arg13[%c0_42, %c0_43], %50 {strides = array<i32>} : memref<8x128xf32, #tpu.memory_space<vmem>>, vector<8x128xf32>,
      %cst_44 = arith.constant 0xFF800000 : f32
      %52 = vector.broadcast %cst_44 : f32 to vector<1x128xf32>
      %c0_45 = arith.constant 0 : index
      %c0_46 = arith.constant 0 : index
      %53 = vector.load %arg14[%c0_45, %c0_46] : memref<1x128xf32, #tpu.memory_space<vmem>>, vector<1x128xf32>
      tpu.vector_store %arg14[%c0_45, %c0_46], %52 {strides = array<i32>} : memref<1x128xf32, #tpu.memory_space<vmem>>, vector<1x128xf32>,
      %cst_47 = arith.constant 0.000000e+00 : f32
      %54 = vector.broadcast %cst_47 : f32 to vector<1x128xf32>
      %c0_48 = arith.constant 0 : index
      %c0_49 = arith.constant 0 : index
      %55 = vector.load %arg15[%c0_48, %c0_49] : memref<1x128xf32, #tpu.memory_space<vmem>>, vector<1x128xf32>
      tpu.vector_store %arg15[%c0_48, %c0_49], %54 {strides = array<i32>} : memref<1x128xf32, #tpu.memory_space<vmem>>, vector<1x128xf32>,
      %cst_50 = arith.constant 0.000000e+00 : f32
      %56 = vector.broadcast %cst_50 : f32 to vector<64x128xf32>
      %c0_51 = arith.constant 0 : index
      %c0_52 = arith.constant 0 : index
      %57 = vector.load %arg16[%c0_51, %c0_52] : memref<64x128xf32, #tpu.memory_space<vmem>>, vector<64x128xf32>
      tpu.vector_store %arg16[%c0_51, %c0_52], %56 {strides = array<i32>} : memref<64x128xf32, #tpu.memory_space<vmem>>, vector<64x128xf32>,
    } else {
    }
    %c0 = arith.constant 0 : index
    %c0_1 = arith.constant 0 : index
    %3 = vector.load %arg8[%c0, %c0_1] : memref<8x64xf32, #tpu.memory_space<vmem>>, vector<8x64xf32>
    %c0_2 = arith.constant 0 : index
    %c0_3 = arith.constant 0 : index
    %c0_4 = arith.constant 0 : index
    %4 = vector.load %arg4[%c0_2, %c0_3, %c0_4] : memref<1x64x128xf32, #tpu.memory_space<vmem>>, vector<1x64x128xf32>
    %5 = vector.shape_cast %4 : vector<1x64x128xf32> to vector<64x128xf32>
    %cst = arith.constant dense<0.000000e+00> : vector<8x128xf32>
    %6 = tpu.matmul %3, %5, %cst {dimension_numbers = #tpu.dot_dimension_numbers<[1], [0], [0], [1], [0, 0, 1, 1], [], []>} : vector<8x64xf32>, vector<64x128xf32>, vector<8x128xf32> -> vector<8x128xf32>
    %c0_5 = arith.constant 0 : index
    %c0_6 = arith.constant 0 : index
    %7 = vector.load %arg9[%c0_5, %c0_6] : memref<8x1xf32, #tpu.memory_space<vmem>>, vector<8x1xf32>
    %8 = vector.broadcast %7 : vector<8x1xf32> to vector<8x128xf32>
    %9 = arith.addf %6, %8 : vector<8x128xf32>
    %c0_7 = arith.constant 0 : index
    %c0_8 = arith.constant 0 : index
    %10 = vector.load %arg10[%c0_7, %c0_8] : memref<64x64xf32, #tpu.memory_space<vmem>>, vector<64x64xf32>
    %c0_9 = arith.constant 0 : index
    %c0_10 = arith.constant 0 : index
    %c0_11 = arith.constant 0 : index
    %11 = vector.load %arg5[%c0_9, %c0_10, %c0_11] : memref<1x64x128xf32, #tpu.memory_space<vmem>>, vector<1x64x128xf32>
    %12 = vector.shape_cast %11 : vector<1x64x128xf32> to vector<64x128xf32>
    %cst_12 = arith.constant dense<0.000000e+00> : vector<64x128xf32>
    %13 = tpu.matmul %10, %12, %cst_12 {dimension_numbers = #tpu.dot_dimension_numbers<[1], [0], [0], [1], [0, 0, 1, 1], [], []>} : vector<64x64xf32>, vector<64x128xf32>, vector<64x128xf32> -> vector<64x128xf32>
    %c0_13 = arith.constant 0 : index
    %c0_14 = arith.constant 0 : index
    %14 = vector.load %arg11[%c0_13, %c0_14] : memref<64x1xf32, #tpu.memory_space<vmem>>, vector<64x1xf32>
    %15 = vector.broadcast %14 : vector<64x1xf32> to vector<64x128xf32>
    %16 = arith.addf %13, %15 : vector<64x128xf32>
    %c0_15 = arith.constant 0 : index
    %c0_16 = arith.constant 0 : index
    %17 = vector.load %arg13[%c0_15, %c0_16] : memref<8x128xf32, #tpu.memory_space<vmem>>, vector<8x128xf32>
    %cst_17 = arith.constant dense<0.000000e+00> : vector<128x128xf32>
    %18 = tpu.matmul %9, %17, %cst_17 {dimension_numbers = #tpu.dot_dimension_numbers<[0], [0], [1], [1], [0, 1, 1, 1], [], []>} : vector<8x128xf32>, vector<8x128xf32>, vector<128x128xf32> -> vector<128x128xf32>
    %c0_18 = arith.constant 0 : index
    %c0_19 = arith.constant 0 : index
    %19 = vector.load %arg14[%c0_18, %c0_19] : memref<1x128xf32, #tpu.memory_space<vmem>>, vector<1x128xf32>
    %cst_20 = arith.constant dense<0xFF800000> : vector<128xf32>
    %20 = vector.multi_reduction <maximumf>, %18, %cst_20 [0] : vector<128x128xf32> to vector<128xf32>
    %21 = vector.shape_cast %20 : vector<128xf32> to vector<1x128xf32>
    %22 = arith.maximumf %19, %21 : vector<1x128xf32>
    %23 = arith.subf %19, %22 : vector<1x128xf32>
    %24 = math.exp %23 : vector<1x128xf32>
    %25 = vector.broadcast %22 : vector<1x128xf32> to vector<128x128xf32>
    %26 = arith.subf %18, %25 : vector<128x128xf32>
    %27 = math.exp %26 : vector<128x128xf32>
    %c0_21 = arith.constant 0 : index
    %c0_22 = arith.constant 0 : index
    %28 = vector.load %arg15[%c0_21, %c0_22] : memref<1x128xf32, #tpu.memory_space<vmem>>, vector<1x128xf32>
    %29 = arith.mulf %24, %28 : vector<1x128xf32>
    %cst_23 = arith.constant dense<0.000000e+00> : vector<128xf32>
    %30 = vector.multi_reduction <add>, %27, %cst_23 [0] : vector<128x128xf32> to vector<128xf32>
    %31 = vector.shape_cast %30 : vector<128xf32> to vector<1x128xf32>
    %32 = arith.addf %29, %31 : vector<1x128xf32>
    %c0_24 = arith.constant 0 : index
    %c0_25 = arith.constant 0 : index
    %33 = vector.load %arg15[%c0_24, %c0_25] : memref<1x128xf32, #tpu.memory_space<vmem>>, vector<1x128xf32>
    tpu.vector_store %arg15[%c0_24, %c0_25], %32 {strides = array<i32>} : memref<1x128xf32, #tpu.memory_space<vmem>>, vector<1x128xf32>,
    %c0_26 = arith.constant 0 : index
    %c0_27 = arith.constant 0 : index
    %34 = vector.load %arg16[%c0_26, %c0_27] : memref<64x128xf32, #tpu.memory_space<vmem>>, vector<64x128xf32>
    %35 = vector.broadcast %24 : vector<1x128xf32> to vector<64x128xf32>
    %36 = arith.mulf %35, %34 : vector<64x128xf32>
    %cst_28 = arith.constant dense<0.000000e+00> : vector<64x128xf32>
    %37 = tpu.matmul %16, %27, %cst_28 {dimension_numbers = #tpu.dot_dimension_numbers<[1], [0], [0], [1], [0, 0, 1, 1], [], []>} : vector<64x128xf32>, vector<128x128xf32>, vector<64x128xf32> -> vector<64x128xf32>
    %38 = arith.addf %36, %37 : vector<64x128xf32>
    %c0_29 = arith.constant 0 : index
    %c0_30 = arith.constant 0 : index
    %39 = vector.load %arg16[%c0_29, %c0_30] : memref<64x128xf32, #tpu.memory_space<vmem>>, vector<64x128xf32>
    tpu.vector_store %arg16[%c0_29, %c0_30], %38 {strides = array<i32>} : memref<64x128xf32, #tpu.memory_space<vmem>>, vector<64x128xf32>,
    %c0_31 = arith.constant 0 : index
    %c0_32 = arith.constant 0 : index
    %40 = vector.load %arg14[%c0_31, %c0_32] : memref<1x128xf32, #tpu.memory_space<vmem>>, vector<1x128xf32>
    tpu.vector_store %arg14[%c0_31, %c0_32], %22 {strides = array<i32>} : memref<1x128xf32, #tpu.memory_space<vmem>>, vector<1x128xf32>,
    %c1_i32 = arith.constant 1 : i32
    %41 = arith.cmpi eq, %arg2, %c1_i32 : i32
    %42 = arith.extui %41 : i1 to i32
    %c0_i32_33 = arith.constant 0 : i32
    %43 = arith.cmpi ne, %42, %c0_i32_33 : i32
    scf.if %43 {
      %c0_34 = arith.constant 0 : index
      %c0_35 = arith.constant 0 : index
      %44 = vector.load %arg15[%c0_34, %c0_35] : memref<1x128xf32, #tpu.memory_space<vmem>>, vector<1x128xf32>
      %45 = tpu.reciprocal %44 {approx = true} : vector<1x128xf32> -> vector<1x128xf32>
      %c0_36 = arith.constant 0 : index
      %c0_37 = arith.constant 0 : index
      %46 = vector.load %arg16[%c0_36, %c0_37] : memref<64x128xf32, #tpu.memory_space<vmem>>, vector<64x128xf32>
      %47 = vector.broadcast %45 : vector<1x128xf32> to vector<64x128xf32>
      %48 = arith.mulf %46, %47 : vector<64x128xf32>
      %c0_38 = arith.constant 0 : index
      %c0_39 = arith.constant 0 : index
      %c0_40 = arith.constant 0 : index
      %49 = vector.load %arg12[%c0_38, %c0_39, %c0_40] : memref<1x64x128xf32, #tpu.memory_space<vmem>>, vector<1x64x128xf32>
      %50 = vector.shape_cast %49 : vector<1x64x128xf32> to vector<64x128xf32>
      %51 = vector.shape_cast %48 : vector<64x128xf32> to vector<1x64x128xf32>
      tpu.vector_store %arg12[%c0_38, %c0_39, %c0_40], %51 {strides = array<i32>} : memref<1x64x128xf32, #tpu.memory_space<vmem>>, vector<1x64x128xf32>,
    } else {
    }
    return
  }
  func.func @transform_0(%arg0: i32, %arg1: i32, %arg2: i32) -> (i32, i32, i32) {
    %c0_i32 = arith.constant 0 : i32
    %c0_i32_0 = arith.constant 0 : i32
    return %arg0, %c0_i32, %arg1 : i32, i32, i32
  }
  func.func @transform_1(%arg0: i32, %arg1: i32, %arg2: i32) -> (i32, i32, i32) {
    %c0_i32 = arith.constant 0 : i32
    %c0_i32_0 = arith.constant 0 : i32
    return %arg0, %c0_i32, %arg2 : i32, i32, i32
  }
  func.func @transform_2(%arg0: i32, %arg1: i32, %arg2: i32) -> (i32, i32, i32) {
    %c0_i32 = arith.constant 0 : i32
    %c0_i32_0 = arith.constant 0 : i32
    return %arg0, %c0_i32, %arg2 : i32, i32, i32
  }
  func.func @transform_3(%arg0: i32, %arg1: i32, %arg2: i32) -> (i32, i32) {
    %c0_i32 = arith.constant 0 : i32
    %c0_i32_0 = arith.constant 0 : i32
    %c0_i32_1 = arith.constant 0 : i32
    return %c0_i32, %c0_i32_0 : i32, i32
  }
  func.func @transform_4(%arg0: i32, %arg1: i32, %arg2: i32) -> (i32, i32) {
    %c0_i32 = arith.constant 0 : i32
    %c0_i32_0 = arith.constant 0 : i32
    %c0_i32_1 = arith.constant 0 : i32
    return %c0_i32, %c0_i32_0 : i32, i32
  }
  func.func @transform_5(%arg0: i32, %arg1: i32, %arg2: i32) -> (i32, i32) {
    %c0_i32 = arith.constant 0 : i32
    %c0_i32_0 = arith.constant 0 : i32
    %c0_i32_1 = arith.constant 0 : i32
    return %c0_i32, %c0_i32_0 : i32, i32
  }
  func.func @transform_6(%arg0: i32, %arg1: i32, %arg2: i32) -> (i32, i32) {
    %c0_i32 = arith.constant 0 : i32
    %c0_i32_0 = arith.constant 0 : i32
    %c0_i32_1 = arith.constant 0 : i32
    return %c0_i32, %c0_i32_0 : i32, i32
  }
  func.func @transform_7(%arg0: i32, %arg1: i32, %arg2: i32) -> (i32, i32) {
    %c0_i32 = arith.constant 0 : i32
    %c0_i32_0 = arith.constant 0 : i32
    %c0_i32_1 = arith.constant 0 : i32
    return %c0_i32, %c0_i32_0 : i32, i32
  }
  func.func @transform_8(%arg0: i32, %arg1: i32, %arg2: i32) -> (i32, i32) {
    %c0_i32 = arith.constant 0 : i32
    %c0_i32_0 = arith.constant 0 : i32
    %c0_i32_1 = arith.constant 0 : i32
    return %c0_i32, %c0_i32_0 : i32, i32
  }
  func.func @transform_9(%arg0: i32, %arg1: i32, %arg2: i32) -> (i32, i32, i32) {
    %c0_i32 = arith.constant 0 : i32
    %c0_i32_0 = arith.constant 0 : i32
    return %arg0, %c0_i32, %arg1 : i32, i32, i32
  }
}

</mosaic_0001>

<bundles_post_ra>
// kernel: tpu_custom_call.1
= control target key start
LH: loop header
LB: loop body
LE: loop exit
PB: predicated region body
PF: predicated region fallthrough
CT: control target
= control target key end

     0   :  { %s2272_s0 = inlined_call_operand.hbm [shape: f32[2,64,256], index: 0, kind: input, shape index: {}]   ;;  %s2273_s1 = inlined_call_operand.hbm [shape: f32[2,64,256], index: 1, kind: input, shape index: {}]   ;;  %s2274_s2 = inlined_call_operand.hbm [shape: f32[2,64,256], index: 2, kind: input, shape index: {}]   ;;  %s2275_s3 = inlined_call_operand.vmem [shape: f32[8,64], index: 3, kind: input, shape index: {}]   ;;  %s2276_s4 = inlined_call_operand.vmem [shape: f32[8,1], index: 4, kind: input, shape index: {}]   ;;  %s2277_s5 = inlined_call_operand.vmem [shape: f32[8,64], index: 5, kind: input, shape index: {}]   ;;  %s2278_s6 = inlined_call_operand.vmem [shape: f32[8,1], index: 6, kind: input, shape index: {}]   ;;  %s2279_s7 = inlined_call_operand.vmem [shape: f32[64,64], index: 7, kind: input, shape index: {}]   ;;  %s2280_s8 = inlined_call_operand.vmem [shape: f32[64,1], index: 8, kind: input, shape index: {}]   ;;  %s2281_s9 = inlined_call_operand.hbm [shape: f32[2,64,256], index: 9, kind: output, shape index: {}]  }
   0x1   :  { %2307 = sst [smem:[#allocation32_spill]] %s2273_s1 }
   0x2   :  { %2308 = sst [smem:[#allocation33_spill]] %s2274_s2 }
   0x3   :  { %2309 = sst [smem:[#allocation34_spill]] %s2275_s3 }
   0x4   :  { %2310 = sst [smem:[#allocation35_spill]] %s2276_s4 }
   0x5   :  { %2311 = sst [smem:[#allocation36_spill]] %s2277_s5 }
   0x6   :  { %2312 = sst [smem:[#allocation37_spill]] %s2278_s6 }
   0x7   :  { %2313 = sst [smem:[#allocation38_spill]] %s2279_s7 }
   0x8   :  { %2314 = sst [smem:[#allocation39_spill]] %s2280_s8 }
   0x9   :  { %2315 = sst [smem:[#allocation40_spill]] %s2281_s9 }
   0xa   :  { %14 = vsyncpa [#allocation7], 0 }
   0xb   :  { %16 = vsyncpa [#allocation7 + $0x1], 0 }
   0xc   :  { %17 = vsyncpa [#allocation10], 0 }
   0xd   :  { %19 = vsyncpa [#allocation10 + $0x1], 0 }
   0xe   :  { %20 = vsyncpa [#allocation8], 0 }
   0xf   :  { %22 = vsyncpa [#allocation8 + $0x1], 0  ;;  %s1744_s30 = smov 0   ;;  %s1746_s10 = smov 0  }
  0x10   :  { %s1748_s11 = smov 0   ;;  %s1750_s12 = smov 0  }
  0x11   :  { %s1752_s13 = smov 0   ;;  %s1754_s14 = smov 0  }
  0x12   :  { %s1756_s15 = smov 0   ;;  %s1758_s16 = smov 0  }
  0x13   :  { %s1760_s17 = smov 0   ;;  %s1762_s18 = smov 0  }
  0x14   :  { %s1764_s19 = smov 0   ;;  %s1766_s20 = smov 0  }
  0x15   :  { %s1768_s21 = smov 0  }
  0x16 LB: > { %2316 = sst [smem:[#allocation16_spill]] %s1638_s10  ;;  %s1808_s22 = sadd.s32 4294967295, %s1682_s21   ;;  %s1682_s21 = sphi %s1768_s21, %s28_s21   ;;  %s1678_s20 = sphi %s1766_s20, %s2379_s20   ;;  %s1674_s19 = sphi %s1764_s19, %s2389_s19   ;;  %s1670_s18 = sphi %s1762_s18, %s2388_s18   ;;  %s1666_s17 = sphi %s1760_s17, %s2387_s17   ;;  %s1662_s16 = sphi %s1758_s16, %s2376_s16   ;;  %s1658_s15 = sphi %s1756_s15, %s2386_s15   ;;  %s1654_s14 = sphi %s1754_s14, %s2385_s14   ;;  %s1650_s13 = sphi %s1752_s13, %s2384_s13   ;;  %s1646_s12 = sphi %s1750_s12, %s2375_s12   ;;  %s1642_s11 = sphi %s1748_s11, %s2383_s11   ;;  %s1638_s10 = sphi %s1746_s10, %s2382_s10   ;;  %s1634_s30 = sphi %s1744_s30, %s2381_s30  }
  0x17   : > { %2317 = sst [smem:[#allocation17_spill]] %s1646_s12  ;;  %s40_s23 = sadd.s32 1, %s1670_s18 }
  0x18   : > { %2318 = sst [smem:[#allocation18_spill]] %s1650_s13  ;;  %p1811_p0 = scmp.ge.s32.totalorder %s40_s23, 2 }
  0x19   : > { %2319 = sst [smem:[#allocation19_spill]] %s1658_s15  ;;  %p64_p1 = scmp.eq.s32.totalorder %s1682_s21, 0 }
  0x1a   : > { %2320 = sst [smem:[#allocation20_spill]] %s1662_s16  ;;  %p70_p2 = scmp.eq.s32.totalorder %s1808_s22, 0 }
  0x1b   : > { %2321 = sst [smem:[#allocation21_spill]] %s1666_s17  ;;  %s2391_s23 = smov (%p1811_p0, %s40_s23), 0 }
  0x1c   : > { %2322 = sst [smem:[#allocation22_spill]] %s1674_s19  ;;  %p91_p3 = scmp.ne.s32.totalorder %s1642_s11, %s1638_s10 }
  0x1d   : > { %2323 = sst [smem:[#allocation23_spill]] %s1678_s20  ;;  %p97_p4 = scmp.ne.s32.totalorder %s1638_s10, %s1634_s30 }
  0x1e   : > { %2324 = sst [smem:[#allocation24_spill]] %s1808_s22  ;;  %p1830_p5 = por %p91_p3, %p64_p1 }
  0x1f   : > { %p1836_p6 = por %p97_p4, %p70_p2  ;;  %p1293_p7 = scmp.lt.s32.totalorder %s1682_s21, 8 }
  0x20   : > { %s1208_s25 = sshll.u32 %s1678_s20, 4  ;;  %s344_s9 = sand.u32 1, %s1682_s21  }
  0x21   : > { %s2327_s29 = scalar_select %p1836_p6, 1, 0 }
  0x22   : > { %s346_s16 = sand.u32 1, %s1642_s11   ;;  %s352_s27 = sadd.s32 %s1670_s18, %s1208_s25 }
  0x23   : > { %2328 = sst [smem:[#allocation25_spill]] %s2327_s29  ;;  %s1210_s26 = sshll.u32 %s346_s16, 6 }
  0x24   : > { %s1212_s17 = sshll.u32 %s352_s27, 3  ;;  %s348_s30 = scalar_lea.vmem [#allocation9], %s1210_s26 }
  0x25   : > { %s357_s8 = sshll.u32 %s348_s30, 4  ;;  %s2329_s1 = sld [smem:[#allocation32_spill]]  ;;  %s358_s8 = int_to_ptr.vmem [resolvable:$true] %s357_s8 }
  0x26   : > { %p1854_p8 = pnand %p1293_p7, %p1830_p5  ;;  %s2331_s2 = sld [smem:[#allocation33_spill]] }
  0x27   : > { %s1861_s5 = scalar_lea.sflag [#allocation10], %s344_s9  ;;  %s2287_s7 = smov 128  }
  0x28   : > { %s2289_s28 = smov 8   ;;  %s371_s9 = scalar_lea.vmem [#allocation11], %s1210_s26 }
  0x29   : > { %s1869_s16 = sshll.u32 %s371_s9, 4  ;;  %p1216_p9 = scmp.ge.s32.totalorder %s1682_s21, 1 }
  0x2a   : > { %2332 = sst [smem:[#allocation26_spill]] %s1869_s16  ;;  %p388_p10 = scmp.lt.s32.totalorder %s1682_s21, 9 }
  0x2b   : > { %s354_s6 = scalar_lea.hbm %s2329_s1, %s1212_s17  ;;  %s43_s26 = sadd.s32 1, %s1674_s19 }
  0x2c   : > { %s355_s3 = sshll.u32 %s354_s6, 4  ;;  %s377_s30 = scalar_lea.hbm %s2331_s2, %s1212_s17  ;;  %s356_s3 = int_to_ptr.hbm [resolvable:$true] %s355_s3 }
  0x2d   : > { %s2285_s6 = smov 256   ;;  %s378_s17 = sshll.u32 %s377_s30, 4  ;;  %s1871_s17 = int_to_ptr.hbm [resolvable:$true] %s378_s17 }
  0x2e   : > { %1285 = dma.hbm_to_vmem [thread:$0]  (!%p1854_p8), %s356_s3, 1024, %s358_s8, %s1861_s5, %s2285_s6, %s2287_s7, %s2289_s28  }
  0x2f   : > { %p1876_p11 = pnand %p1216_p9, %p388_p10  ;;  %s1204_s8 = sadd.s32 4294967294, %s1682_s21  }
  0x30   : > { %s56_s27 = sadd.s32 1, %s1654_s14  ;;  %s2393_s26 = smov (!%p1811_p0, %s43_s26), %s1674_s19 }
  0x31   : > { %p63_p12 = scmp.ne.s32.totalorder %s1654_s14, %s1650_s13  ;;  %p69_p13 = scmp.ne.s32.totalorder %s1650_s13, %s1646_s12 }
  0x32   : > { %p45_p3 = scmp.ge.s32.totalorder %s2393_s26, 2  ;;  %p277_p4 = scmp.eq.s32.totalorder %s1808_s22, 7 }
  0x33   : > { %p1893_p5 = por %p64_p1, %p63_p12  ;;  %p1902_p9 = por %p70_p2, %p69_p13 }
  0x34   : > { %s2395_s26 = smov (%p45_p3, %s2393_s26), 0  ;;  %s2338_s24 = sadd.s32 1, %s1678_s20 }
  0x35   : > { %s2335_s9 = scalar_select %p1902_p9, 1, 0 }
  0x36   : > { %2337 = sst [smem:[#allocation28_spill]] %s2395_s26  ;;  %s2397_s24 = smov (!%p45_p3, %s2338_s24), %s1678_s20 }
  0x37   : > { %2336 = sst [smem:[#allocation27_spill]] %s2335_s9  ;;  %s52_s6 = ssub.s32 %s1674_s19, %s2395_s26 }
  0x38   : > { %p1913_p0 = por %p277_p4, %p63_p12  ;;  %p49_p1 = scmp.ge.s32.totalorder %s2397_s24, 2 }
  0x39   : > { %p283_p10 = scmp.eq.s32.totalorder %s1204_s8, 7  ;;  %s321_s28 = sand.u32 1, %s1654_s14  }
  0x3a   : > { %s2339_s7 = scalar_select %p1913_p0, 1, 0 }
  0x3b   : > { %s329_s16 = sadd.s32 %s1674_s19, %s1208_s25  ;;  %s2399_s24 = smov (%p49_p1, %s2397_s24), 0 }
  0x3c   : > { %2340 = sst [smem:[#allocation29_spill]] %s2339_s7  ;;  %p1926_p2 = por %p283_p10, %p69_p13 }
  0x3d   : > { %2341 = sst [smem:[#allocation30_spill]] %s2399_s24  ;;  %s51_s2 = ssub.s32 %s1678_s20, %s2399_s24 }
  0x3e   : > { %s2342_s1 = scalar_select %p1926_p2, 1, 0 }
  0x3f   : > { %s2344_s26 = sld [smem:[#allocation26_spill]]  ;;  %s1207_s7 = sshll.u32 %s321_s28, 6 }
  0x40   : > { %2343 = sst [smem:[#allocation31_spill]] %s2342_s1  ;;  %s53_s8 = sor.u32 %s52_s6, %s51_s2 }
  0x41   : > { %s2345_s15 = ssub.s32 %s1670_s18, %s2391_s23  ;;  %p54_p12 = scmp.eq.s32.totalorder %s53_s8, 0 }
  0x42   : > { %s81_s29 = sor.u32 %s2345_s15, %s51_s2  ;;  %s1209_s25 = sshll.u32 %s329_s16, 3 }
  0x43   : > { %p82_p3 = scmp.eq.s32.totalorder %s81_s29, 0  ;;  %s2346_s12 = sadd.s32 1, %s1642_s11 }
  0x44   : > { %s1936_s19 = scalar_select %p54_p12, %s1654_s14, %s56_s27  }
  0x45   : > { %s1941_s10 = scalar_select %p82_p3, %s1642_s11, %s2346_s12  }
  0x46   : > { %s331_s24 = scalar_lea.hbm %s2272_s0, %s1209_s25  ;;  %s325_s20 = scalar_lea.vmem [#allocation6], %s1207_s7 }
  0x47   : > { %s334_s9 = sshll.u32 %s325_s20, 4  ;;  %s332_s13 = sshll.u32 %s331_s24, 4  ;;  %s335_s9 = int_to_ptr.vmem [resolvable:$true] %s334_s9  ;;  %s333_s13 = int_to_ptr.hbm [resolvable:$true] %s332_s13 }
  0x48   : > { %p1280_p13 = pnand %p1293_p7, %p1893_p5  ;;  %s2347_s2 = smov 8  }
  0x49   : > { %s2348_s15 = smov 128   ;;  %s2349_s29 = smov 256  }
  0x4a   : > { %s2350_s6 = int_to_ptr.vmem [resolvable:$true] %s2344_s26  ;;  %s322_s12 = scalar_lea.sflag [#allocation7], %s321_s28 }
  0x4b   : > { %1288 = dma.hbm_to_vmem [thread:$0]  (!%p1854_p8), %s1871_s17, 1024, %s2350_s6, %s1861_s5, %s2349_s29, %s2348_s15, %s2347_s2  }
  0x4c   : > { %1282 = dma.hbm_to_vmem [thread:$0]  (!%p1280_p13), %s333_s13, 1024, %s335_s9, %s322_s12, %s2349_s29, %s2348_s15, %s2347_s2  }
  0x4d   : > { %392 = sbr.rel (%p1876_p11) target bundleno = 1110 (0x456), region = 56  ;;  %s2351_s1 = sld [smem:[#allocation18_spill]] (!%p1876_p11) }
  0x53   : > { %s1965_s22 = sand.u32 1, %s2351_s1  }
  0x54   : > { %s1217_s4 = sshll.u32 %s1965_s22, 6  ;;  %s395_s7 = scalar_lea.sflag [#allocation7], %s1965_s22 }
  0x55   : > { %s1969_s16 = scalar_lea.vmem [#allocation6], %s1217_s4 }
  0x56   : > { %1621 = dma.done.wait (%p1902_p9), %s395_s7, 1024  }
  0x57   : > { %1623 = vsyncadd (%p1902_p9), %s395_s7, 4294966272  ;;  %s2353_s5 = sld [smem:[#allocation24_spill]] }
  0x58   : > { %s2354_s13 = sld [smem:[#allocation16_spill]] }
  0x5d   : > { %s404_s17 = sand.u32 1, %s2353_s5  }
  0x5e   : > { %s406_s3 = sand.u32 1, %s2354_s13   ;;  %s405_s27 = scalar_lea.sflag [#allocation10], %s404_s17 }
  0x5f   : > { %s1218_s26 = sshll.u32 %s406_s3, 6 }
  0x60   : > { %s1977_s30 = scalar_lea.vmem [#allocation9], %s1218_s26 }
  0x61   : > { %1625 = dma.done.wait (%p1836_p6), %s405_s27, 2048  }
  0x62   : > { %1627 = vsyncadd (%p1836_p6), %s405_s27, 4294965248  ;;  %s1983_s9 = scalar_lea.vmem [#allocation11], %s1218_s26  ;;  %s1985_s24 = scalar_lea.vmem [#allocation12], %s1217_s4 }
  0x63   : > { %s2356_s8 = sld [smem:[#allocation19_spill]] }
  0x69   : > { %p1221_p7 = scmp.ne.s32.totalorder %s2356_s8, 0 }
  0x6a   : > { %s2357_s15 = sld [smem:[#allocation35_spill]] (!%p1221_p7) }
  0x6b   : > { %467 = sbr.rel (%p1221_p7) target bundleno = 257 (0x101), region = 72  ;;  %s2358_s12 = sld [smem:[#allocation34_spill]] (!%p1221_p7) }
  0x70   : > { %v476_v0 = vld [vmem:[%s1969_s16 + $0x38] sm:$0xff]  ;;  %v475_v1 = vld [vmem:[%s1969_s16 + $0x30] sm:$0xff]  ;;  %v1687_v2 = vmov 0   ;;  %v474_v3 = vld [vmem:[%s1969_s16 + $0x28] sm:$0xff]  ;;  %vm483_vm0 = vcmask 523264   ;;  %v1688_v11 = vmov -inf  }
  0x71   : > { %495 = vmatpush.msra.mxu0 %v476_v0  ;;  %1410 = vset.pattern.permute.xlu0 %v1687_v2  ;;  %v477_v4 = vld [vmem:[%s2357_s15] sm:$0xff]  ;;  %v473_v5 = vld [vmem:[%s1969_s16 + $0x20] sm:$0xff]  ;;  %v470_v8 = vld [vmem:[%s1969_s16 + $0x8] sm:$0xff]  ;;  %508 = vst [vmem:[#allocation3] sm:$0x1] %v1688_v11  ;;  %v1689_v12 = vmov 0.0  }
  0x72   : > { %480 = vperm.xlu0 %1410, %v477_v4   ;;  %v472_v6 = vld [vmem:[%s1969_s16 + $0x18] sm:$0xff]  ;;  %v471_v7 = vld [vmem:[%s1969_s16 + $0x10] sm:$0xff]  ;;  %v469_v9 = vld [vmem:[%s1969_s16] sm:$0xff]  ;;  %509 = vst [vmem:[#allocation4] sm:$0x1] %v1689_v12 }
  0x73   : > { %496 = vmatpush.msra.mxu0 %v475_v1  ;;  %v468_v10 = vld [vmem:[%s2358_s12] sm:$0xff]  ;;  %510 = vst [vmem:[#allocation5 + $0x30] sm:$0xff] %v1689_v12 }
  0x74   : > { %511 = vst [vmem:[#allocation5] sm:$0xff] %v1689_v12 }
  0x75   : > { %497 = vmatpush.msra.mxu0 %v474_v3  ;;  %512 = vst [vmem:[#allocation5 + $0x18] sm:$0xff] %v1689_v12 }
  0x76   : > { %513 = vst [vmem:[#allocation5 + $0x10] sm:$0xff] %v1689_v12 }
  0x77   : > { %498 = vmatpush.msra.mxu0 %v473_v5  ;;  %514 = vst [vmem:[#allocation5 + $0x8] sm:$0xff] %v1689_v12 }
  0x78   : > { %515 = vst [vmem:[#allocation5 + $0x20] sm:$0xff] %v1689_v12 }
  0x79   : > { %499 = vmatpush.msra.mxu0 %v472_v6  ;;  %516 = vst [vmem:[#allocation5 + $0x28] sm:$0xff] %v1689_v12 }
  0x7a   : > { %517 = vst [vmem:[#allocation5 + $0x38] sm:$0xff] %v1689_v12 }
  0x7b   : > { %500 = vmatpush.msra.mxu0 %v471_v7 }
  0x7d   : > { %501 = vmatpush.msra.mxu0 %v470_v8 }
  0x7f   : > { %502 = vmatpush.msra.mxu0 %v469_v9 }
  0x80   : > { %1222 = vmatmul.msk.f32.vlgmr.msra.gmra.mxu0 %vm483_vm0, %v468_v10 }
  0xe4   : > { %v481_v13 = vpop.permute.xlu0 %480 }
  0xfd   : > { %v504_v14 = vpop.f32.mrf.mxu0 }
  0xfe   : > { %v505_v15 = vadd.f32 %v504_v14, %v481_v13 }
 0x100   : > { %507 = vst [vmem:[#allocation2] sm:$0xff] %v505_v15 }
 0x101 PF: > { %v526_v16 = vld [vmem:[%s1977_s30 + $0x38] sm:$0xff]  ;;  %v525_v17 = vld [vmem:[%s1977_s30 + $0x30] sm:$0xff]  ;;  %v1690_v18 = vmov 0   ;;  %v524_v19 = vld [vmem:[%s1977_s30 + $0x28] sm:$0xff]  ;;  %s2359_s4 = sld [smem:[#allocation37_spill]]  ;;  %vm533_vm1 = vcmask 523264  }
 0x102   : > { %545 = vmatpush.msra.mxu0 %v526_v16  ;;  %1411 = vset.pattern.permute.xlu0 %v1690_v18  ;;  %v523_v21 = vld [vmem:[%s1977_s30 + $0x20] sm:$0xff]  ;;  %v522_v22 = vld [vmem:[%s1977_s30 + $0x18] sm:$0xff]  ;;  %v521_v23 = vld [vmem:[%s1977_s30 + $0x10] sm:$0xff]  ;;  %s2360_s5 = sld [smem:[#allocation36_spill]]  ;;  %vm719_vm2 = vcmask 64512  }
 0x103   : > { %1412 = vset.pattern.permute.xlu1 %v1690_v18  ;;  %1413 = vset.pattern.permute.xlu2 %v1690_v18  ;;  %v520_v24 = vld [vmem:[%s1977_s30 + $0x8] sm:$0xff]  ;;  %v519_v25 = vld [vmem:[%s1977_s30] sm:$0xff]  ;;  %v572_v42 = vld [vmem:[%s1983_s9 + $0x38] sm:$0xff]  ;;  %s2361_s17 = sld [smem:[#allocation38_spill]] }
 0x104   : > { %546 = vmatpush.msra.mxu0 %v525_v17  ;;  %v571_v43 = vld [vmem:[%s1983_s9 + $0x30] sm:$0xff]  ;;  %653 = vmatpush.msra.mxu1 %v572_v42  ;;  %v570_v45 = vld [vmem:[%s1983_s9 + $0x28] sm:$0xff]  ;;  %v569_v46 = vld [vmem:[%s1983_s9 + $0x20] sm:$0xff]  ;;  %s2363_s12 = sld [smem:[#allocation39_spill]] }
 0x105   : > { %v568_v47 = vld [vmem:[%s1983_s9 + $0x18] sm:$0xff]  ;;  %v567_v48 = vld [vmem:[%s1983_s9 + $0x10] sm:$0xff]  ;;  %v566_v49 = vld [vmem:[%s1983_s9 + $0x8] sm:$0xff] }
 0x106   : > { %547 = vmatpush.msra.mxu0 %v524_v19  ;;  %654 = vmatpush.msra.mxu1 %v571_v43  ;;  %v565_v51 = vld [vmem:[%s1983_s9] sm:$0xff]  ;;  %v2124_v43 = vld [vmem:[#allocation3] sm:$0x1] }
 0x107   : > { %v527_v20 = vld [vmem:[%s2359_s4] sm:$0xff]  ;;  %s2365_s4 = sld [smem:[#allocation19_spill]] }
 0x108   : > { %530 = vperm.xlu0 %1411, %v527_v20   ;;  %548 = vmatpush.msra.mxu0 %v523_v21  ;;  %v518_v26 = vld [vmem:[%s2360_s5] sm:$0xff] }
 0x109   : > { %v686_v27 = vld [vmem:[#allocation2] sm:$0xff]  ;;  %655 = vmatpush.msra.mxu1 %v570_v45  ;;  %s2362_s3 = smov %s2361_s17 }
 0x10a   : > { %549 = vmatpush.msra.mxu0 %v522_v22  ;;  %1254 = vmatpush.msra.mxu2 %v686_v27  ;;  %v557_v52 = vld [vmem:[%s2361_s17] sm:$0xff]  ;;  %v558_v54 = vld [vmem:[%s2362_s3 + $0x8] sm:$0xff]  ;;  %v559_v56 = vld [vmem:[%s2362_s3 + $0x10] sm:$0xff]  ;;  %s2364_s1 = smov %s2363_s12 }
 0x10b   : > { %656 = vmatpush.msra.mxu1 %v569_v46  ;;  %v560_v58 = vld [vmem:[%s2362_s3 + $0x18] sm:$0xff]  ;;  %v561_v59 = vld [vmem:[%s2362_s3 + $0x20] sm:$0xff]  ;;  %v574_v60 = vld [vmem:[%s2363_s12 + $0x8] sm:$0xff] }
 0x10c   : > { %550 = vmatpush.msra.mxu0 %v521_v23  ;;  %588 = vperm.xlu1 %1412, %v574_v60   ;;  %v562_v61 = vld [vmem:[%s2362_s3 + $0x28] sm:$0xff]  ;;  %v563_v62 = vld [vmem:[%s2362_s3 + $0x30] sm:$0xff]  ;;  %v564_v0 = vld [vmem:[%s2362_s3 + $0x38] sm:$0xff] }
 0x10d   : > { %657 = vmatpush.msra.mxu1 %v568_v47  ;;  %v575_v63 = vld [vmem:[%s2364_s1 + $0x10] sm:$0xff]  ;;  %v576_v1 = vld [vmem:[%s2364_s1 + $0x18] sm:$0xff]  ;;  %v578_v2 = vld [vmem:[%s2364_s1 + $0x28] sm:$0xff]  ;;  %p1248_p6 = scmp.ne.s32.totalorder %s2365_s4, 1 }
 0x10e   : > { %551 = vmatpush.msra.mxu0 %v520_v24  ;;  %598 = vperm.xlu2 %1413, %v576_v1   ;;  %v577_v3 = vld [vmem:[%s2364_s1 + $0x20] sm:$0xff]  ;;  %v580_v4 = vld [vmem:[%s2364_s1 + $0x38] sm:$0xff]  ;;  %v579_v5 = vld [vmem:[%s2364_s1 + $0x30] sm:$0xff] }
 0x10f   : > { %658 = vmatpush.msra.mxu1 %v567_v48  ;;  %v573_v7 = vld [vmem:[%s2364_s1] sm:$0xff] }
 0x110   : > { %552 = vmatpush.msra.mxu0 %v519_v25 }
 0x111   : > { %1223 = vmatmul.msk.f32.vlgmr.msra.gmra.mxu0 %vm533_vm1, %v518_v26  ;;  %659 = vmatpush.msra.mxu1 %v566_v49 }
 0x112   : > { %783 = vmatpush.msrb.mxu0 %v686_v27 }
 0x113   : > { %660 = vmatpush.msra.mxu1 %v565_v51 }
 0x114   : > { %1224 = vmatmul.msk.f32.vlgmr.msra.gmra.mxu1 %vm533_vm1, %v557_v52  ;;  %593 = vperm.xlu1 %1412, %v575_v63  }
 0x116   : > { %603 = vperm.xlu2 %1413, %v577_v3  }
 0x11c   : > { %1225 = vmatmul.msk.f32.gmra.mxu1 %vm533_vm1, %v558_v54  ;;  %608 = vperm.xlu1 %1412, %v578_v2  }
 0x11e   : > { %613 = vperm.xlu2 %1413, %v579_v5  }
 0x124   : > { %1226 = vmatmul.msk.f32.gmra.mxu1 %vm533_vm1, %v559_v56  ;;  %618 = vperm.xlu1 %1412, %v580_v4  }
 0x126   : > { %583 = vperm.xlu2 %1413, %v573_v7  }
 0x12c   : > { %1227 = vmatmul.msk.f32.gmra.mxu1 %vm533_vm1, %v560_v58 }
 0x134   : > { %1228 = vmatmul.msk.f32.gmra.mxu1 %vm533_vm1, %v561_v59 }
 0x13c   : > { %1229 = vmatmul.msk.f32.gmra.mxu1 %vm533_vm1, %v562_v61 }
 0x144   : > { %1230 = vmatmul.msk.f32.gmra.mxu1 %vm533_vm1, %v563_v62 }
 0x14c   : > { %1231 = vmatmul.msk.f32.gmra.mxu1 %vm533_vm1, %v564_v0 }
 0x17a   : > { %v531_v28 = vpop.permute.xlu0 %530 }
 0x18e   : > { %v554_v29 = vpop.f32.mrf.mxu0 }
 0x18f   : > { %v555_v30 = vadd.f32 %v554_v29, %v531_v28 }
 0x191   : > { %687 = vxpose.xlu0.b32.start.end [1/1] (short) %v555_v30, 128 }
 0x235   : > { %v703_v31 = vpop.trf.xlu0 }
 0x236   : > { %1232 = vmatmul.msk.f32.vlgmr.msrb.gmra.mxu0 %vm719_vm2, %v703_v31 }
 0x23d   : > { %v704_v32 = vpop.trf.xlu0 }
 0x23e   : > { %1233 = vmatmul.msk.f32.gmra.mxu0 %vm719_vm2, %v704_v32 }
 0x245   : > { %v705_v33 = vpop.trf.xlu0 }
 0x246   : > { %1234 = vmatmul.msk.f32.gmra.mxu0 %vm719_vm2, %v705_v33 }
 0x24d   : > { %v706_v34 = vpop.trf.xlu0 }
 0x24e   : > { %1235 = vmatmul.msk.f32.gmra.mxu0 %vm719_vm2, %v706_v34 }
 0x255   : > { %v707_v35 = vpop.trf.xlu0 }
 0x256   : > { %1236 = vmatmul.msk.f32.gmra.mxu0 %vm719_vm2, %v707_v35 }
 0x25d   : > { %v708_v36 = vpop.trf.xlu0 }
 0x25e   : > { %1237 = vmatmul.msk.f32.gmra.mxu0 %vm719_vm2, %v708_v36 }
 0x265   : > { %v709_v37 = vpop.trf.xlu0 }
 0x266   : > { %1238 = vmatmul.msk.f32.vlgmr.msra.gmra.mxu2 %vm719_vm2, %v709_v37 }
 0x26d   : > { %v710_v38 = vpop.trf.xlu0 }
 0x26e   : > { %1239 = vmatmul.msk.f32.gmra.mxu2 %vm719_vm2, %v710_v38 }
 0x275   : > { %v711_v39 = vpop.trf.xlu0 }
 0x276   : > { %1240 = vmatmul.msk.f32.gmra.mxu2 %vm719_vm2, %v711_v39 }
 0x27d   : > { %v712_v40 = vpop.trf.xlu0 }
 0x27e   : > { %1241 = vmatmul.msk.f32.gmra.mxu2 %vm719_vm2, %v712_v40 }
 0x285   : > { %v713_v41 = vpop.trf.xlu0 }
 0x286   : > { %1242 = vmatmul.msk.f32.gmra.mxu2 %vm719_vm2, %v713_v41 }
 0x28d   : > { %v714_v44 = vpop.trf.xlu0 }
 0x28e   : > { %1243 = vmatmul.msk.f32.gmra.mxu2 %vm719_vm2, %v714_v44 }
 0x295   : > { %v715_v50 = vpop.trf.xlu0 }
 0x296   : > { %1244 = vmatmul.msk.f32.gmra.mxu2 %vm719_vm2, %v715_v50 }
 0x29d   : > { %v716_v53 = vpop.trf.xlu0 }
 0x29e   : > { %1245 = vmatmul.msk.f32.gmra.mxu2 %vm719_vm2, %v716_v53 }
 0x2a5   : > { %v717_v55 = vpop.trf.xlu0 }
 0x2a6   : > { %1246 = vmatmul.msk.f32.gmra.mxu2 %vm719_vm2, %v717_v55 }
 0x2ad   : > { %v718_v57 = vpop.trf.xlu0 }
 0x2ae   : > { %1247 = vmatmul.msk.f32.gmra.mxu2 %vm719_vm2, %v718_v57  ;;  %v2139_v57 = vpop.permute.xlu2 %598 }
 0x2b3   : > { %v2101_v9 = vpop.f32.mrf.mxu0 }
 0x2bb   : > { %v2105_v11 = vpop.f32.mrf.mxu0 }
 0x2c3   : > { %v2107_v14 = vpop.f32.mrf.mxu0 }
 0x2cb   : > { %v2109_v16 = vpop.f32.mrf.mxu0 }
 0x2d3   : > { %v2111_v18 = vpop.f32.mrf.mxu0 }
 0x2d4   : > { %v834_v23 = vmax.f32 %v2101_v9, %v2111_v18 }
 0x2db   : > { %v2113_v20 = vpop.f32.mrf.mxu0 }
 0x2dc   : > { %v835_v22 = vmax.f32 %v2105_v11, %v2113_v20 }
 0x2e9   : > { %v2094_v6 = vpop.f32.mrf.mxu2 }
 0x2ea   : > { %v836_v24 = vmax.f32 %v2107_v14, %v2094_v6 }
 0x2f1   : > { %v2099_v8 = vpop.f32.mrf.mxu2 }
 0x2f2   : > { %v837_v25 = vmax.f32 %v2109_v16, %v2099_v8 }
 0x2f9   : > { %v2103_v10 = vpop.f32.mrf.mxu2 }
 0x2fa   : > { %v838_v27 = vmax.f32 %v834_v23, %v2103_v10 }
 0x301   : > { %v812_v12 = vpop.f32.mrf.mxu2 }
 0x302   : > { %v839_v26 = vmax.f32 %v835_v22, %v812_v12 }
 0x309   : > { %v815_v13 = vpop.f32.mrf.mxu2 }
 0x30a   : > { %v840_v28 = vmax.f32 %v836_v24, %v815_v13 }
 0x311   : > { %v818_v15 = vpop.f32.mrf.mxu2 }
 0x312   : > { %v841_v29 = vmax.f32 %v837_v25, %v818_v15 }
 0x319   : > { %v821_v17 = vpop.f32.mrf.mxu2 }
 0x31a   : > { %v842_v32 = vmax.f32 %v838_v27, %v821_v17 }
 0x321   : > { %v824_v19 = vpop.f32.mrf.mxu2 }
 0x322   : > { %v843_v30 = vmax.f32 %v839_v26, %v824_v19 }
 0x324   : > { %v846_v35 = vmax.f32 %v842_v32, %v843_v30 }
 0x329   : > { %v827_v21 = vpop.f32.mrf.mxu2 }
 0x32a   : > { %v844_v33 = vmax.f32 %v840_v28, %v827_v21 }
 0x331   : > { %v830_v31 = vpop.f32.mrf.mxu2 }
 0x332   : > { %v845_v34 = vmax.f32 %v841_v29, %v830_v31 }
 0x334   : > { %v847_v36 = vmax.f32 %v844_v33, %v845_v34 }
 0x336   : > { %v848_v37 = vmax.f32 %v846_v35, %v847_v36 }
 0x338   : > { %v849_v38 = vrot.slane %v848_v37, 4 }
 0x33a   : > { %v850_v39 = vmax.f32 %v848_v37, %v849_v38 }
 0x33c   : > { %v851_v40 = vrot.slane %v850_v39, 2 }
 0x33e   : > { %v852_v41 = vmax.f32 %v850_v39, %v851_v40 }
 0x340   : > { %v853_v42 = vrot.slane %v852_v41, 1 }
 0x342   : > { %v854_v44 = vmax.f32 %v852_v41, %v853_v42 }
 0x344   : > { %v2127_v45 = vmax.f32 %v2124_v43, %v854_v44  ;;  %v589_v44 = vpop.permute.xlu1 %588 }
 0x346   : > { %v2130_v46 = vperm.slane %v2127_v45, 0  ;;  %1011 = vst [vmem:[#allocation3] sm:$0x1] %v2127_v45 }
 0x348   : > { %v877_v47 = vsub.f32 %v830_v31, %v2130_v46  ;;  %v876_v48 = vsub.f32 %v827_v21, %v2130_v46  ;;  %v875_v49 = vsub.f32 %v824_v19, %v2130_v46  ;;  %v874_v52 = vsub.f32 %v821_v17, %v2130_v46  ;;  %v2174_v17 = vpop.permute.xlu2 %603 }
 0x349   : > { %v873_v54 = vsub.f32 %v818_v15, %v2130_v46  ;;  %v872_v56 = vsub.f32 %v815_v13, %v2130_v46  ;;  %v871_v59 = vsub.f32 %v812_v12, %v2130_v46  ;;  %v870_v60 = vsub.f32 %v2103_v10, %v2130_v46 }
 0x34a   : > { %v908_v50 = vmul.f32 1.442695, %v877_v47  ;;  %v906_v51 = vmul.f32 1.442695, %v876_v48  ;;  %v904_v53 = vmul.f32 1.442695, %v875_v49  ;;  %v863_v63 = vsub.f32 %v2105_v11, %v2130_v46  ;;  %v2164_v11 = vpop.f32.mrf.mxu1 }
 0x34b   : > { %v902_v55 = vmul.f32 1.442695, %v874_v52  ;;  %v900_v58 = vmul.f32 1.442695, %v873_v54  ;;  %v898_v62 = vmul.f32 1.442695, %v872_v56  ;;  %v862_v0 = vsub.f32 %v2101_v9, %v2130_v46 }
 0x34c   : > { %1414 = vpow2.f32 %v908_v50  ;;  %v896_v2 = vmul.f32 1.442695, %v871_v59  ;;  %v869_v3 = vsub.f32 %v2099_v8, %v2130_v46  ;;  %v894_v4 = vmul.f32 1.442695, %v870_v60 }
 0x34d   : > { %1416 = vpow2.f32 %v906_v51  ;;  %v864_v5 = vsub.f32 %v2107_v14, %v2130_v46  ;;  %v868_v9 = vsub.f32 %v2094_v6, %v2130_v46  ;;  %v880_v10 = vmul.f32 1.442695, %v863_v63 }
 0x34e   : > { %1418 = vpow2.f32 %v904_v53  ;;  %v865_v8 = vsub.f32 %v2109_v16, %v2130_v46  ;;  %v878_v12 = vmul.f32 1.442695, %v862_v0  ;;  %v892_v14 = vmul.f32 1.442695, %v869_v3 }
 0x34f   : > { %1420 = vpow2.f32 %v902_v55  ;;  %v867_v15 = vsub.f32 %v2113_v20, %v2130_v46  ;;  %v866_v6 = vsub.f32 %v2111_v18, %v2130_v46  ;;  %v882_v19 = vmul.f32 1.442695, %v864_v5  ;;  %v594_v55 = vpop.permute.xlu1 %593 }
 0x350   : > { %1422 = vpow2.f32 %v900_v58  ;;  %v890_v21 = vmul.f32 1.442695, %v868_v9  ;;  %v884_v20 = vmul.f32 1.442695, %v865_v8  ;;  %v2184_v32 = vpop.permute.xlu2 %613  ;;  %v856_v59 = vsub.f32 %v2124_v43, %v2127_v45  ;;  %v910_v8 = vld [vmem:[#allocation4] sm:$0x1] }
 0x351   : > { %1424 = vpow2.f32 %v898_v62  ;;  %v888_v23 = vmul.f32 1.442695, %v867_v15  ;;  %v886_v24 = vmul.f32 1.442695, %v866_v6 }
 0x352   : > { %v2144_v61 = vpop.eup %1414  ;;  %1426 = vpow2.f32 %v896_v2  ;;  %v665_v28 = vpop.f32.mrf.mxu1  ;;  %v857_v63 = vmul.f32 1.442695, %v856_v59 }
 0x353   : > { %954 = vmatpush.msra.mxu0 %v2144_v61  ;;  %1255 = vmatpush.msra.mxu3 %v2144_v61  ;;  %v2152_v1 = vpop.eup %1416  ;;  %1428 = vpow2.f32 %v894_v4  ;;  %v666_v47 = vadd.f32 %v665_v28, %v589_v44  ;;  %v941_v44 = vld [vmem:[#allocation5 + $0x28] sm:$0xff] }
 0x354   : > { %v2160_v7 = vpop.eup %1418  ;;  %1430 = vpow2.f32 %v880_v10 }
 0x355   : > { %955 = vmatpush.msra.mxu0 %v2152_v1  ;;  %1256 = vmatpush.msra.mxu3 %v2152_v1  ;;  %v2170_v13 = vpop.eup %1420  ;;  %1432 = vpow2.f32 %v878_v12 }
 0x356   : > { %v2180_v16 = vpop.eup %1422  ;;  %1434 = vpow2.f32 %v892_v14 }
 0x357   : > { %956 = vmatpush.msra.mxu0 %v2160_v7  ;;  %1257 = vmatpush.msra.mxu3 %v2160_v7  ;;  %v1425_v22 = vpop.eup %1424  ;;  %1436 = vpow2.f32 %v882_v19 }
 0x358   : > { %v1427_v25 = vpop.eup %1426  ;;  %1438 = vpow2.f32 %v890_v21  ;;  %v584_v46 = vpop.permute.xlu2 %583 }
 0x359   : > { %957 = vmatpush.msra.mxu0 %v2170_v13  ;;  %1258 = vmatpush.msra.mxu3 %v2170_v13  ;;  %v1429_v18 = vpop.eup %1428  ;;  %1440 = vpow2.f32 %v884_v20  ;;  %v663_v49 = vadd.f32 %v2164_v11, %v584_v46 }
 0x35a   : > { %v1431_v26 = vpop.eup %1430  ;;  %1442 = vpow2.f32 %v888_v23  ;;  %v668_v41 = vpop.f32.mrf.mxu1 }
 0x35b   : > { %958 = vmatpush.msra.mxu0 %v2180_v16  ;;  %1259 = vmatpush.msra.mxu3 %v2180_v16  ;;  %v1433_v27 = vpop.eup %1432  ;;  %1444 = vpow2.f32 %v886_v24  ;;  %v669_v56 = vadd.f32 %v668_v41, %v594_v55  ;;  %v936_v24 = vld [vmem:[#allocation5] sm:$0xff] }
 0x35c   : > { %v1435_v29 = vpop.eup %1434  ;;  %v912_v30 = vadd.f32 %v1433_v27, %v1431_v26  ;;  %1446 = vpow2.f32 %v857_v63 }
 0x35d   : > { %959 = vmatpush.msra.mxu0 %v1425_v22  ;;  %1260 = vmatpush.msra.mxu3 %v1425_v22  ;;  %v1437_v31 = vpop.eup %1436 }
 0x35e   : > { %v1439_v33 = vpop.eup %1438  ;;  %v913_v34 = vadd.f32 %v1437_v31, %v912_v30 }
 0x35f   : > { %960 = vmatpush.msra.mxu0 %v1427_v25  ;;  %1261 = vmatpush.msra.mxu3 %v1427_v25  ;;  %v1441_v35 = vpop.eup %1440 }
 0x360   : > { %v1443_v36 = vpop.eup %1442  ;;  %v914_v37 = vadd.f32 %v1441_v35, %v913_v34 }
 0x361   : > { %961 = vmatpush.msra.mxu0 %v1429_v18  ;;  %1262 = vmatpush.msra.mxu3 %v1429_v18  ;;  %v1445_v38 = vpop.eup %1444 }
 0x362   : > { %v915_v39 = vadd.f32 %v1445_v38, %v914_v37  ;;  %v671_v53 = vpop.f32.mrf.mxu1  ;;  %v1447_v11 = vpop.eup %1446 }
 0x363   : > { %962 = vmatpush.msra.mxu0 %v1435_v29  ;;  %1263 = vmatpush.msra.mxu3 %v1435_v29  ;;  %v672_v0 = vadd.f32 %v671_v53, %v2139_v57  ;;  %v911_v12 = vmul.f32 %v1447_v11, %v910_v8  ;;  %v609_v57 = vpop.permute.xlu1 %608  ;;  %v944_v21 = vperm.slane %v1447_v11, 0 }
 0x364   : > { %v916_v40 = vadd.f32 %v1443_v36, %v915_v39  ;;  %v940_v39 = vld [vmem:[#allocation5 + $0x20] sm:$0xff] }
 0x365   : > { %963 = vmatpush.msra.mxu0 %v1439_v33  ;;  %1264 = vmatpush.msra.mxu3 %v1439_v33  ;;  %v952_v46 = vmul.f32 %v944_v21, %v941_v44 }
 0x366   : > { %v917_v42 = vadd.f32 %v1439_v33, %v916_v40  ;;  %v951_v40 = vmul.f32 %v944_v21, %v940_v39 }
 0x367   : > { %964 = vmatpush.msra.mxu0 %v1443_v36  ;;  %1265 = vmatpush.msra.mxu3 %v1443_v36 }
 0x368   : > { %v918_v48 = vadd.f32 %v1435_v29, %v917_v42 }
 0x369   : > { %965 = vmatpush.msra.mxu0 %v1445_v38  ;;  %1266 = vmatpush.msra.mxu3 %v1445_v38 }
 0x36a   : > { %v919_v50 = vadd.f32 %v1429_v18, %v918_v48  ;;  %v674_v3 = vpop.f32.mrf.mxu1 }
 0x36b   : > { %966 = vmatpush.msra.mxu0 %v1441_v35  ;;  %1267 = vmatpush.msra.mxu3 %v1441_v35  ;;  %v675_v43 = vadd.f32 %v674_v3, %v2174_v17  ;;  %v619_v19 = vpop.permute.xlu1 %618  ;;  %v935_v17 = vld [vmem:[#allocation5 + $0x30] sm:$0xff]  ;;  %v939_v35 = vld [vmem:[#allocation5 + $0x8] sm:$0xff] }
 0x36c   : > { %v920_v51 = vadd.f32 %v1427_v25, %v919_v50  ;;  %v946_v20 = vmul.f32 %v944_v21, %v935_v17  ;;  %v947_v25 = vmul.f32 %v944_v21, %v936_v24  ;;  %v950_v36 = vmul.f32 %v944_v21, %v939_v35 }
 0x36d   : > { %967 = vmatpush.msra.mxu0 %v1437_v31  ;;  %1268 = vmatpush.msra.mxu3 %v1437_v31  ;;  %v938_v31 = vld [vmem:[#allocation5 + $0x10] sm:$0xff] }
 0x36e   : > { %v921_v52 = vadd.f32 %v1425_v22, %v920_v51 }
 0x36f   : > { %968 = vmatpush.msra.mxu0 %v1431_v26  ;;  %1269 = vmatpush.msra.mxu3 %v1431_v26 }
 0x370   : > { %v922_v54 = vadd.f32 %v2180_v16, %v921_v52 }
 0x371   : > { %969 = vmatpush.msra.mxu0 %v1433_v27  ;;  %1270 = vmatpush.msra.mxu3 %v1433_v27  ;;  %v937_v27 = vld [vmem:[#allocation5 + $0x18] sm:$0xff] }
 0x372   : > { %970 = vmatmul.f32.vlgmr.msra.gmra.mxu0 %v663_v49  ;;  %973 = vmatmul.f32.vlgmr.msra.gmra.mxu3 %v666_v47  ;;  %v923_v58 = vadd.f32 %v2170_v13, %v922_v54  ;;  %v948_v28 = vmul.f32 %v944_v21, %v937_v27  ;;  %v942_v49 = vld [vmem:[#allocation5 + $0x38] sm:$0xff] }
 0x373   : > { %v953_v50 = vmul.f32 %v944_v21, %v942_v49 }
 0x374   : > { %v924_v60 = vadd.f32 %v2160_v7, %v923_v58  ;;  %v677_v7 = vpop.f32.mrf.mxu1 }
 0x376   : > { %v925_v62 = vadd.f32 %v2152_v1, %v924_v60 }
 0x378   : > { %v926_v2 = vadd.f32 %v2144_v61, %v925_v62  ;;  %v678_v61 = vadd.f32 %v677_v7, %v609_v57 }
 0x37a   : > { %976 = vmatmul.f32.gmra.mxu3 %v669_v56  ;;  %v927_v4 = vrot.slane %v926_v2, 4 }
 0x37c   : > { %v928_v5 = vadd.f32 %v927_v4, %v926_v2  ;;  %v680_v14 = vpop.f32.mrf.mxu1 }
 0x37d   : > { %v681_v15 = vadd.f32 %v680_v14, %v2184_v32  ;;  %v949_v32 = vmul.f32 %v944_v21, %v938_v31 }
 0x37e   : > { %v929_v9 = vrot.slane %v928_v5, 2 }
 0x380   : > { %v930_v10 = vadd.f32 %v929_v9, %v928_v5 }
 0x382   : > { %979 = vmatmul.f32.gmra.mxu3 %v672_v0  ;;  %v931_v45 = vrot.slane %v930_v10, 1 }
 0x384   : > { %v932_v1 = vadd.f32 %v931_v45, %v930_v10  ;;  %v683_v6 = vpop.f32.mrf.mxu1 }
 0x385   : > { %v684_v16 = vadd.f32 %v683_v6, %v619_v19 }
 0x386   : > { %v933_v13 = vadd.f32 %v932_v1, %v911_v12 }
 0x388   : > { %934 = vst [vmem:[#allocation4] sm:$0x1] %v933_v13 }
 0x38a   : > { %982 = vmatmul.f32.gmra.mxu3 %v675_v43 }
 0x392   : > { %985 = vmatmul.f32.gmra.mxu3 %v678_v61 }
 0x39a   : > { %988 = vmatmul.f32.gmra.mxu3 %v681_v15 }
 0x3a2   : > { %991 = vmatmul.f32.gmra.mxu3 %v684_v16 }
 0x3ef   : > { %v971_v22 = vpop.f32.mrf.mxu0 }
 0x3f0   : > { %v995_v23 = vadd.f32 %v971_v22, %v946_v20 }
 0x3f2   : > { %1003 = vst [vmem:[#allocation5 + $0x30] sm:$0xff] %v995_v23 }
 0x3f5   : > { %v974_v18 = vpop.f32.mrf.mxu3 }
 0x3f6   : > { %v996_v26 = vadd.f32 %v974_v18, %v947_v25 }
 0x3f8   : > { %1004 = vst [vmem:[#allocation5] sm:$0xff] %v996_v26 }
 0x3fd   : > { %v977_v29 = vpop.f32.mrf.mxu3 }
 0x3fe   : > { %v997_v30 = vadd.f32 %v977_v29, %v948_v28 }
 0x400   : > { %1005 = vst [vmem:[#allocation5 + $0x18] sm:$0xff] %v997_v30 }
 0x405   : > { %v980_v33 = vpop.f32.mrf.mxu3 }
 0x406   : > { %v998_v34 = vadd.f32 %v980_v33, %v949_v32 }
 0x408   : > { %1006 = vst [vmem:[#allocation5 + $0x10] sm:$0xff] %v998_v34 }
 0x40d   : > { %v983_v37 = vpop.f32.mrf.mxu3 }
 0x40e   : > { %v999_v38 = vadd.f32 %v983_v37, %v950_v36 }
 0x410   : > { %1007 = vst [vmem:[#allocation5 + $0x8] sm:$0xff] %v999_v38 }
 0x415   : > { %v986_v41 = vpop.f32.mrf.mxu3 }
 0x416   : > { %v1000_v42 = vadd.f32 %v986_v41, %v951_v40 }
 0x418   : > { %1008 = vst [vmem:[#allocation5 + $0x20] sm:$0xff] %v1000_v42 }
 0x41d   : > { %v989_v47 = vpop.f32.mrf.mxu3 }
 0x41e   : > { %v1001_v48 = vadd.f32 %v989_v47, %v952_v46 }
 0x420   : > { %1009 = vst [vmem:[#allocation5 + $0x28] sm:$0xff] %v1001_v48 }
 0x424   : > { %1015 = sbr.rel (%p1248_p6) target bundleno = 1085 (0x43d), region = 76 }
 0x425   : > { %v992_v51 = vpop.f32.mrf.mxu3 }
 0x426   : > { %v1002_v52 = vadd.f32 %v992_v51, %v953_v50 }
 0x428   : > { %1010 = vst [vmem:[#allocation5 + $0x38] sm:$0xff] %v1002_v52 }
 0x429   : > { %v1016_v53 = vld [vmem:[#allocation4] sm:$0x1]  ;;  %v1018_v55 = vld [vmem:[#allocation5 + $0x30] sm:$0xff]  ;;  %v1019_v56 = vld [vmem:[#allocation5] sm:$0xff] }
 0x42a   : > { %1448 = vrcp.f32 %v1016_v53  ;;  %v1020_v58 = vld [vmem:[#allocation5 + $0x18] sm:$0xff]  ;;  %v1021_v60 = vld [vmem:[#allocation5 + $0x10] sm:$0xff]  ;;  %v1022_v62 = vld [vmem:[#allocation5 + $0x8] sm:$0xff] }
 0x42b   : > { %v1023_v3 = vld [vmem:[#allocation5 + $0x20] sm:$0xff]  ;;  %v1024_v5 = vld [vmem:[#allocation5 + $0x28] sm:$0xff] }
 0x42f   : > { %v1025_v10 = vld [vmem:[#allocation5 + $0x38] sm:$0xff] }
 0x430   : > { %v1449_v54 = vpop.eup %1448 }
 0x431   : > { %v1027_v59 = vperm.slane %v1449_v54, 0 }
 0x433   : > { %v1029_v63 = vmul.f32 %v1027_v59, %v1018_v55  ;;  %v1030_v0 = vmul.f32 %v1027_v59, %v1019_v56  ;;  %v1031_v2 = vmul.f32 %v1027_v59, %v1020_v58  ;;  %v1032_v4 = vmul.f32 %v1027_v59, %v1021_v60 }
 0x434   : > { %v1033_v9 = vmul.f32 %v1027_v59, %v1022_v62  ;;  %v1034_v11 = vmul.f32 %v1027_v59, %v1023_v3  ;;  %v1035_v8 = vmul.f32 %v1027_v59, %v1024_v5  ;;  %v1036_v43 = vmul.f32 %v1027_v59, %v1025_v10 }
 0x435   : > { %1037 = vst [vmem:[%s1985_s24] sm:$0xff] %v1029_v63 }
 0x436   : > { %1038 = vst [vmem:[%s1985_s24 + $0x8] sm:$0xff] %v1030_v0 }
 0x437   : > { %1039 = vst [vmem:[%s1985_s24 + $0x10] sm:$0xff] %v1031_v2 }
 0x438   : > { %1040 = vst [vmem:[%s1985_s24 + $0x18] sm:$0xff] %v1032_v4 }
 0x439   : > { %1041 = vst [vmem:[%s1985_s24 + $0x20] sm:$0xff] %v1033_v9 }
 0x43a   : > { %1042 = vst [vmem:[%s1985_s24 + $0x28] sm:$0xff] %v1034_v11 }
 0x43b   : > { %1043 = vst [vmem:[%s1985_s24 + $0x30] sm:$0xff] %v1035_v8 }
 0x43c   : > { %1044 = vst [vmem:[%s1985_s24 + $0x38] sm:$0xff] %v1036_v43 }
 0x43d PF: > { %s2366_s7 = sld [smem:[#allocation21_spill]]  ;;  %s1059_s17 = sshll.u32 %s1985_s24, 4  ;;  %s1060_s17 = int_to_ptr.vmem [resolvable:$true] %s1059_s17 }
 0x43e   : > { %s2367_s16 = sld [smem:[#allocation20_spill]]  ;;  %s1046_s2 = scalar_lea.sflag [#allocation8], %s1965_s22 }
 0x43f   : > { %s2369_s9 = sld [smem:[#allocation40_spill]] }
 0x443   : > { %s1250_s13 = sshll.u32 %s2366_s7, 4 }
 0x444   : > { %s1056_s28 = sadd.s32 %s2367_s16, %s1250_s13 }
 0x445   : > { %s1251_s26 = sshll.u32 %s1056_s28, 3  ;;  %s1560_s24 = scalar_lea.hbm %s2369_s9, 256 }
 0x446   : > { %s1058_s8 = scalar_lea.hbm %s2369_s9, %s1251_s26 }
 0x447   : > { %s1061_s25 = sshll.u32 %s1058_s8, 4  ;;  %s1062_s25 = int_to_ptr.hbm [resolvable:$true] %s1061_s25 }
 0x448   : > { %s1554_s15 = sshra.s32 %s1062_s25, 4  ;;  %s1555_s15 = int_to_ptr.hbm [resolvable:$true] %s1554_s15 }
 0x449   : > { %s1556_s29 = scalar_lea.hbm %s1555_s15, 64  ;;  %p1561_p5 = scmp.lt.s32.totalorder %s1555_s15, %s2369_s9 }
 0x44a   : > { %p1557_p8 = scmp.ne.s32.totalorder %s1555_s15, %s1556_s29  ;;  %p1562_p9 = scmp.lt.s32.totalorder %s1560_s24, %s1556_s29 }
 0x44c   : > { %p1558_p11 = pnand %p1557_p8, %p1913_p0  ;;  %p1563_p1 = por %p1562_p9, %p1561_p5 }
 0x44e   : > { %p1559_p4 = pneg %p1558_p11 }
 0x450   : > { %p1564_p10 = pnand %p1563_p1, %p1559_p4 }
 0x452   : > { %1567 = shalt.err (!%p1564_p10)
}
 0x453   : > { %s1691_s22 = smov 128   ;;  %s1692_s7 = smov 256  }
 0x454   : > { %s1693_s16 = smov 8  }
 0x455   : > { %1277 = dma.vmem_to_hbm [thread:$0]  (%p1913_p0), %s1060_s17, 1024, %s1062_s25, %s1046_s2, %s1691_s22, %s1692_s7, %s1693_s16  }
 0x456 PF: > { %s2370_s13 = sld [smem:[#allocation17_spill]]  ;;  %p1294_p12 = scmp.ge.s32.totalorder %s1682_s21, 2 }
 0x458   : > { %p1290_p3 = pnand %p1294_p12, %p1926_p2 }
 0x45a   : > { %p1291_p13 = pneg %p1290_p3 }
 0x45c   : > { %s1076_s26 = sand.u32 1, %s2370_s13  }
 0x45d   : > { %s1077_s27 = scalar_lea.sflag [#allocation8], %s1076_s26 }
 0x45e   : > { %1629 = dma.done.wait (%p1291_p13), %s1077_s27, 1024  }
 0x45f   : > { %1631 = vsyncadd (%p1291_p13), %s1077_s27, 4294966272  ;;  %s28_s21 = sadd.s32 1, %s1682_s21   ;;  %s2373_s5 = sld [smem:[#allocation16_spill]] }
 0x460   : > { %p2228_p7 = scmp.ge.s32.totalorder %s28_s21, 10   ;;  %s2374_s17 = smov %s1941_s10 }
 0x461   : > { %s2375_s12 = sld [smem:[#allocation18_spill]]  ;;  %s2382_s10 = smov %s1642_s11 }
 0x462   : > { %s2376_s16 = sld [smem:[#allocation22_spill]]  ;;  %s2383_s11 = smov %s2374_s17 }
 0x463   : > { %s2377_s8 = sld [smem:[#allocation23_spill]]  ;;  %s2384_s13 = smov %s1654_s14 }
 0x464   : > { %s2378_s25 = sld [smem:[#allocation28_spill]]  ;;  %s2385_s14 = smov %s1936_s19 }
 0x465   : > { %s2379_s20 = sld [smem:[#allocation30_spill]]  ;;  %s2381_s30 = smov %s2373_s5 }
 0x466   : > { %s2386_s15 = smov %s1670_s18  ;;  %s2388_s18 = smov %s2391_s23 }
 0x467   :  { %27 = sbr.rel (!%p2228_p7) target bundleno = 22 (0x16), region = 133 }
 0x469   : > { %s2387_s17 = smov %s2377_s8 }
 0x46a   : > { %s2389_s19 = smov %s2378_s25 }
 0x46c   :  { %1083 = vsyncpa [#allocation7], 1 }
 0x46d   :  { %1085 = vsyncpa [#allocation7 + $0x1], 1 }
 0x46e   :  { %1086 = vsyncpa [#allocation10], 1 }
 0x46f   :  { %1088 = vsyncpa [#allocation10 + $0x1], 1 }
 0x470   :  { %1089 = vsyncpa [#allocation8], 1 }
 0x471   :  { %1091 = vsyncpa [#allocation8 + $0x1], 1 }

</bundles_post_ra>
